<compile_context>
chip_gen: v7x
topology: tpu7x:2x2x1
jax: 0.10.0
libtpu: 0.0.40
codegen_flags: <defaults>
</compile_context>

<pallas_src>
import functools

import jax
import jax.numpy as jnp
from jax.experimental import pallas as pl
from jax.experimental.pallas import tpu as pltpu


def _round_up(x, m):
    return ((x + m - 1) // m) * m


# ----------------------------- fused kernel --------------------------------

def _policy_kernel(state_ref, w1_ref, b1_ref, w2_ref, b2_ref, wh_ref, bh_ref,
                   segid_ref, segmat_ref, out_ref, *, num_heads):
    """relu(relu(s@W1+b1)@W2+b2) @ Wheads + bheads, then per-head softmax.

    segid_ref: (1, P) int32, lane -> head index (padded lanes == num_heads).
    segmat_ref: (P, P) f32, 1.0 where two lanes belong to the same valid head.
    """
    f32 = jnp.float32
    bf16 = jnp.bfloat16

    # ---- MLP trunk: bf16 operands, f32 accumulation (MXU-native). ----
    h = jnp.dot(state_ref[...].astype(bf16), w1_ref[...],
                preferred_element_type=f32)
    h = jnp.maximum(h + b1_ref[...], 0.0)
    h = jnp.dot(h.astype(bf16), w2_ref[...], preferred_element_type=f32)
    h = jnp.maximum(h + b2_ref[...], 0.0)

    # One lane-dense matmul for all heads.
    logits = jnp.dot(h.astype(bf16), wh_ref[...], preferred_element_type=f32)
    logits = logits + bh_ref[...]                       # (tb, P) f32

    seg_id = segid_ref[...]                             # (1, P) int32
    valid = seg_id < num_heads                          # (1, P) bool
    neg_big = f32(-1e30)

    # ---- per-head max (kept segmented for numerical safety) ----
    m = jnp.zeros_like(logits)
    for k in range(num_heads):
        mask = seg_id == k                              # (1, P), one compare
        seg_max = jnp.max(jnp.where(mask, logits, neg_big),
                          axis=-1, keepdims=True)       # (tb, 1)
        m = jnp.where(mask, seg_max, m)

    # exp in f32 (EUP); padded lanes forced to exactly 0.
    e = jnp.where(valid, jnp.exp(logits - m), 0.0)      # (tb, P)

    # ---- segmented sum + broadcast-back on the MXU ----
    # denom[b, p] = sum_q [seg(q) == seg(p)] * e[b, q]
    denom = jnp.dot(e, segmat_ref[...], preferred_element_type=f32)
    denom = jnp.where(valid, denom, 1.0)                # padded lanes: 0 / 1

    out_ref[...] = (e * pl.reciprocal(denom, approx=False)).astype(out_ref.dtype)


# ----------------------------- wrapper --------------------------------------

def policy_net_forward(state, params, *, block_batch=512, return_packed=False):
    """Full PolicyNet forward.

    Returns a list of per-head probability arrays, or (packed_slab, segments)
    if return_packed=True (avoids extra HBM passes over the padded slab).
    """
    w1, b1 = params["w1"], params["b1"]
    w2, b2 = params["w2"], params["b2"]
    wh, bh = params["wh"], params["bh"]
    seg_id, seg_mat = params["seg_id"], params["seg_mat"]
    segments = params["segments"]
    num_heads = params["num_heads"]
    P = wh.shape[1]                       # padded to a multiple of 128 lanes

    B, D = state.shape
    # Batch tile: sublane-aligned, <= block_batch, and (when there are enough
    # rows) small enough that the grid has >= 2 steps so both v7x TensorCores
    # get work under dimension_semantics=("parallel",).
    b8 = _round_up(max(B, 1), 8)
    tb = min(block_batch, b8)
    if b8 >= 16:
        tb = min(tb, _round_up(pl.cdiv(b8, 2), 8))
    tb = _round_up(max(tb, 8), 8)
    padded_B = _round_up(B, tb)
    if padded_B != B:
        state = jnp.pad(state, ((0, padded_B - B), (0, 0)))

    kernel = functools.partial(_policy_kernel, num_heads=num_heads)

    out = pl.pallas_call(
        kernel,
        grid=(padded_B // tb,),
        in_specs=[
            pl.BlockSpec((tb, D), lambda i: (i, 0)),          # state (tiled)
            pl.BlockSpec(w1.shape, lambda i: (0, 0)),         # grid-invariant
            pl.BlockSpec(b1.shape, lambda i: (0, 0)),
            pl.BlockSpec(w2.shape, lambda i: (0, 0)),
            pl.BlockSpec(b2.shape, lambda i: (0, 0)),
            pl.BlockSpec(wh.shape, lambda i: (0, 0)),
            pl.BlockSpec(bh.shape, lambda i: (0, 0)),
            pl.BlockSpec(seg_id.shape, lambda i: (0, 0)),
            pl.BlockSpec(seg_mat.shape, lambda i: (0, 0)),
        ],
        out_specs=pl.BlockSpec((tb, P), lambda i: (i, 0)),    # lane-dense slab
        out_shape=jax.ShapeDtypeStruct((padded_B, P), jnp.float32),
        compiler_params=pltpu.CompilerParams(
            dimension_semantics=("parallel",)),
    )(state, w1, b1, w2, b2, wh, bh, seg_id, seg_mat)

    out = out[:B]
    if return_packed:
        return out, segments
    return [out[:, off:off + sz] for off, sz in segments]


# ----------------------------- param init ----------------------------------

def init_params(key, space_length, action_scale_list):
    """torch.nn.Linear-style init (U[-1/sqrt(in), 1/sqrt(in)]).

    Weights stored as (in_features, out_features).  Matmul weights are kept in
    bf16 (MXU-native, half the DMA bytes); biases stay f32.  Head weights and
    biases are concatenated and padded to a 128-lane-aligned slab.
    """
    def linear(k, fan_in, fan_out):
        kw, kb = jax.random.split(k)
        bound = float(fan_in) ** -0.5
        w = jax.random.uniform(kw, (fan_in, fan_out), jnp.float32, -bound, bound)
        b = jax.random.uniform(kb, (1, fan_out), jnp.float32, -bound, bound)
        return w, b

    num_heads = len(action_scale_list)
    keys = jax.random.split(key, 2 + num_heads)
    w1, b1 = linear(keys[0], space_length, 128)
    w2, b2 = linear(keys[1], 128, 64)
    heads = [linear(keys[2 + i], 64, s) for i, s in enumerate(action_scale_list)]

    total = int(sum(action_scale_list))
    P = pl.cdiv(total, 128) * 128

    wh = jnp.zeros((64, P), jnp.float32)
    bh = jnp.zeros((1, P), jnp.float32)
    seg_id = jnp.full((P,), num_heads, jnp.int32)     # padded lanes -> num_heads
    segments = []
    off = 0
    for i, ((w, b), s) in enumerate(zip(heads, action_scale_list)):
        wh = wh.at[:, off:off + s].set(w)
        bh = bh.at[:, off:off + s].set(b)
        seg_id = seg_id.at[off:off + s].set(i)
        segments.append((off, s))
        off += s
    seg_id = seg_id.reshape(1, P)

    # Same-valid-segment indicator (P, P): drives the MXU segmented sum.
    seg_mat = ((seg_id.T == seg_id) & (seg_id < num_heads)).astype(jnp.float32)

    return {
        "w1": w1.astype(jnp.bfloat16), "b1": b1,
        "w2": w2.astype(jnp.bfloat16), "b2": b2,
        "wh": wh.astype(jnp.bfloat16), "bh": bh,
        "seg_id": seg_id, "seg_mat": seg_mat,
        "segments": tuple(segments),
        "num_heads": num_heads,
        "total_actions": total,
        "heads": heads,   # original f32 per-head params, for the reference check
    }


# ----------------------------- main ----------------------------------------

if __name__ == "__main__":
    batch = 2
    space_length = 8
    action_scale_list = [3, 5, 4]

    key = jax.random.PRNGKey(0)
    k_params, k_state = jax.random.split(key)

    params = init_params(k_params, space_length, action_scale_list)
    state = jax.random.normal(k_state, (batch, space_length), jnp.float32)

    probs_list = policy_net_forward(state, params)
    probs_list = [jax.block_until_ready(p) for p in probs_list]

    # Plain-JAX reference (same weights, f32 math throughout).
    w1f = params["w1"].astype(jnp.float32)
    w2f = params["w2"].astype(jnp.float32)
    x_ref = jnp.maximum(state @ w1f + params["b1"], 0.0)
    x_ref = jnp.maximum(x_ref @ w2f + params["b2"], 0.0)

    ok = True
    for (wh_i, bh_i), p in zip(params["heads"], probs_list):
        ref = jax.nn.softmax(x_ref @ wh_i + bh_i, axis=-1)
        ok = ok and p.shape == (batch, wh_i.shape[1])
        # bf16 matmul operands in the kernel -> allow a few e-3 on the probs.
        ok = ok and bool(jnp.allclose(p, ref, atol=5e-3, rtol=5e-3))
        # Exact reciprocal -> rows sum to 1 to f32 precision.
        ok = ok and bool(jnp.allclose(jnp.sum(p, axis=-1), 1.0, atol=1e-4))

    if ok:
        print("KERNEL_OK")
    else:
        print("KERNEL_MISMATCH")
</pallas_src>

<mosaic_0001>
module attributes {stable_mosaic.version = 11 : i64} {
  func.func @_policy_kernel(%arg0: i32, %arg1: memref<8x8xf32, #tpu.memory_space<vmem>>, %arg2: memref<8x128xbf16, #tpu.memory_space<vmem>>, %arg3: memref<1x128xf32, #tpu.memory_space<vmem>>, %arg4: memref<128x64xbf16, #tpu.memory_space<vmem>>, %arg5: memref<1x64xf32, #tpu.memory_space<vmem>>, %arg6: memref<64x128xbf16, #tpu.memory_space<vmem>>, %arg7: memref<1x128xf32, #tpu.memory_space<vmem>>, %arg8: memref<1x128xi32, #tpu.memory_space<vmem>>, %arg9: memref<128x128xf32, #tpu.memory_space<vmem>>, %arg10: memref<8x128xf32, #tpu.memory_space<vmem>>) attributes {dimension_semantics = [#tpu.dimension_semantics<parallel>], iteration_bounds = array<i64: 1>, scalar_prefetch = 0 : i64, scratch_operands = 0 : i64, tpu.core_type = #tpu.core_type<tc>, window_params = [{transform_indices = @transform_0, window_bounds = array<i64: 8, 8>}, {pipeline_mode = #tpu.pipeline_mode<synchronous>, transform_indices = @transform_1, window_bounds = array<i64: 8, 128>}, {pipeline_mode = #tpu.pipeline_mode<synchronous>, transform_indices = @transform_2, window_bounds = array<i64: 1, 128>}, {pipeline_mode = #tpu.pipeline_mode<synchronous>, transform_indices = @transform_3, window_bounds = array<i64: 128, 64>}, {pipeline_mode = #tpu.pipeline_mode<synchronous>, transform_indices = @transform_4, window_bounds = array<i64: 1, 64>}, {pipeline_mode = #tpu.pipeline_mode<synchronous>, transform_indices = @transform_5, window_bounds = array<i64: 64, 128>}, {pipeline_mode = #tpu.pipeline_mode<synchronous>, transform_indices = @transform_6, window_bounds = array<i64: 1, 128>}, {pipeline_mode = #tpu.pipeline_mode<synchronous>, transform_indices = @transform_7, window_bounds = array<i64: 1, 128>}, {pipeline_mode = #tpu.pipeline_mode<synchronous>, transform_indices = @transform_8, window_bounds = array<i64: 128, 128>}, {transform_indices = @transform_9, window_bounds = array<i64: 8, 128>}]} {
    %c0 = arith.constant 0 : index
    %c0_0 = arith.constant 0 : index
    %0 = vector.load %arg1[%c0, %c0_0] : memref<8x8xf32, #tpu.memory_space<vmem>>, vector<8x8xf32>
    %1 = arith.truncf %0 : vector<8x8xf32> to vector<8x8xbf16>
    %c0_1 = arith.constant 0 : index
    %c0_2 = arith.constant 0 : index
    %2 = vector.load %arg2[%c0_1, %c0_2] : memref<8x128xbf16, #tpu.memory_space<vmem>>, vector<8x128xbf16>
    %cst = arith.constant dense<0.000000e+00> : vector<8x128xf32>
    %3 = tpu.matmul %1, %2, %cst {dimension_numbers = #tpu.dot_dimension_numbers<[1], [0], [0], [1], [0, 0, 1, 1], [], []>} : vector<8x8xbf16>, vector<8x128xbf16>, vector<8x128xf32> -> vector<8x128xf32>
    %c0_3 = arith.constant 0 : index
    %c0_4 = arith.constant 0 : index
    %4 = vector.load %arg3[%c0_3, %c0_4] : memref<1x128xf32, #tpu.memory_space<vmem>>, vector<1x128xf32>
    %5 = vector.broadcast %4 : vector<1x128xf32> to vector<8x128xf32>
    %6 = arith.addf %3, %5 : vector<8x128xf32>
    %cst_5 = arith.constant 0.000000e+00 : f32
    %7 = vector.broadcast %cst_5 : f32 to vector<8x128xf32>
    %8 = arith.maximumf %6, %7 : vector<8x128xf32>
    %9 = arith.truncf %8 : vector<8x128xf32> to vector<8x128xbf16>
    %c0_6 = arith.constant 0 : index
    %c0_7 = arith.constant 0 : index
    %10 = vector.load %arg4[%c0_6, %c0_7] : memref<128x64xbf16, #tpu.memory_space<vmem>>, vector<128x64xbf16>
    %cst_8 = arith.constant dense<0.000000e+00> : vector<8x64xf32>
    %11 = tpu.matmul %9, %10, %cst_8 {dimension_numbers = #tpu.dot_dimension_numbers<[1], [0], [0], [1], [0, 0, 1, 1], [], []>} : vector<8x128xbf16>, vector<128x64xbf16>, vector<8x64xf32> -> vector<8x64xf32>
    %c0_9 = arith.constant 0 : index
    %c0_10 = arith.constant 0 : index
    %12 = vector.load %arg5[%c0_9, %c0_10] : memref<1x64xf32, #tpu.memory_space<vmem>>, vector<1x64xf32>
    %13 = vector.broadcast %12 : vector<1x64xf32> to vector<8x64xf32>
    %14 = arith.addf %11, %13 : vector<8x64xf32>
    %cst_11 = arith.constant 0.000000e+00 : f32
    %15 = vector.broadcast %cst_11 : f32 to vector<8x64xf32>
    %16 = arith.maximumf %14, %15 : vector<8x64xf32>
    %17 = arith.truncf %16 : vector<8x64xf32> to vector<8x64xbf16>
    %c0_12 = arith.constant 0 : index
    %c0_13 = arith.constant 0 : index
    %18 = vector.load %arg6[%c0_12, %c0_13] : memref<64x128xbf16, #tpu.memory_space<vmem>>, vector<64x128xbf16>
    %cst_14 = arith.constant dense<0.000000e+00> : vector<8x128xf32>
    %19 = tpu.matmul %17, %18, %cst_14 {dimension_numbers = #tpu.dot_dimension_numbers<[1], [0], [0], [1], [0, 0, 1, 1], [], []>} : vector<8x64xbf16>, vector<64x128xbf16>, vector<8x128xf32> -> vector<8x128xf32>
    %c0_15 = arith.constant 0 : index
    %c0_16 = arith.constant 0 : index
    %20 = vector.load %arg7[%c0_15, %c0_16] : memref<1x128xf32, #tpu.memory_space<vmem>>, vector<1x128xf32>
    %21 = vector.broadcast %20 : vector<1x128xf32> to vector<8x128xf32>
    %22 = arith.addf %19, %21 : vector<8x128xf32>
    %c0_17 = arith.constant 0 : index
    %c0_18 = arith.constant 0 : index
    %23 = vector.load %arg8[%c0_17, %c0_18] : memref<1x128xi32, #tpu.memory_space<vmem>>, vector<1x128xi32>
    %c3_i32 = arith.constant 3 : i32
    %24 = vector.broadcast %c3_i32 : i32 to vector<1x128xi32>
    %25 = arith.cmpi slt, %23, %24 : vector<1x128xi32>
    %cst_19 = arith.constant 0.000000e+00 : f32
    %26 = vector.broadcast %cst_19 : f32 to vector<8x128xf32>
    %c0_i32 = arith.constant 0 : i32
    %27 = vector.broadcast %c0_i32 : i32 to vector<1x128xi32>
    %28 = arith.cmpi eq, %23, %27 : vector<1x128xi32>
    %cst_20 = arith.constant -1.000000e+30 : f32
    %29 = vector.shape_cast %28 : vector<1x128xi1> to vector<1x128xi1>
    %30 = vector.broadcast %29 : vector<1x128xi1> to vector<8x128xi1>
    %31 = vector.broadcast %cst_20 : f32 to vector<8x128xf32>
    %32 = arith.select %30, %22, %31 : vector<8x128xi1>, vector<8x128xf32>
    %cst_21 = arith.constant dense<0xFF800000> : vector<8xf32>
    %33 = vector.multi_reduction <maximumf>, %32, %cst_21 [1] : vector<8x128xf32> to vector<8xf32>
    %34 = vector.shape_cast %33 : vector<8xf32> to vector<8x1xf32>
    %35 = vector.shape_cast %28 : vector<1x128xi1> to vector<1x128xi1>
    %36 = vector.broadcast %35 : vector<1x128xi1> to vector<8x128xi1>
    %37 = vector.shape_cast %34 : vector<8x1xf32> to vector<8x1xf32>
    %38 = vector.broadcast %37 : vector<8x1xf32> to vector<8x128xf32>
    %39 = arith.select %36, %38, %26 : vector<8x128xi1>, vector<8x128xf32>
    %c1_i32 = arith.constant 1 : i32
    %40 = vector.broadcast %c1_i32 : i32 to vector<1x128xi32>
    %41 = arith.cmpi eq, %23, %40 : vector<1x128xi32>
    %cst_22 = arith.constant -1.000000e+30 : f32
    %42 = vector.shape_cast %41 : vector<1x128xi1> to vector<1x128xi1>
    %43 = vector.broadcast %42 : vector<1x128xi1> to vector<8x128xi1>
    %44 = vector.broadcast %cst_22 : f32 to vector<8x128xf32>
    %45 = arith.select %43, %22, %44 : vector<8x128xi1>, vector<8x128xf32>
    %cst_23 = arith.constant dense<0xFF800000> : vector<8xf32>
    %46 = vector.multi_reduction <maximumf>, %45, %cst_23 [1] : vector<8x128xf32> to vector<8xf32>
    %47 = vector.shape_cast %46 : vector<8xf32> to vector<8x1xf32>
    %48 = vector.shape_cast %41 : vector<1x128xi1> to vector<1x128xi1>
    %49 = vector.broadcast %48 : vector<1x128xi1> to vector<8x128xi1>
    %50 = vector.shape_cast %47 : vector<8x1xf32> to vector<8x1xf32>
    %51 = vector.broadcast %50 : vector<8x1xf32> to vector<8x128xf32>
    %52 = arith.select %49, %51, %39 : vector<8x128xi1>, vector<8x128xf32>
    %c2_i32 = arith.constant 2 : i32
    %53 = vector.broadcast %c2_i32 : i32 to vector<1x128xi32>
    %54 = arith.cmpi eq, %23, %53 : vector<1x128xi32>
    %cst_24 = arith.constant -1.000000e+30 : f32
    %55 = vector.shape_cast %54 : vector<1x128xi1> to vector<1x128xi1>
    %56 = vector.broadcast %55 : vector<1x128xi1> to vector<8x128xi1>
    %57 = vector.broadcast %cst_24 : f32 to vector<8x128xf32>
    %58 = arith.select %56, %22, %57 : vector<8x128xi1>, vector<8x128xf32>
    %cst_25 = arith.constant dense<0xFF800000> : vector<8xf32>
    %59 = vector.multi_reduction <maximumf>, %58, %cst_25 [1] : vector<8x128xf32> to vector<8xf32>
    %60 = vector.shape_cast %59 : vector<8xf32> to vector<8x1xf32>
    %61 = vector.shape_cast %54 : vector<1x128xi1> to vector<1x128xi1>
    %62 = vector.broadcast %61 : vector<1x128xi1> to vector<8x128xi1>
    %63 = vector.shape_cast %60 : vector<8x1xf32> to vector<8x1xf32>
    %64 = vector.broadcast %63 : vector<8x1xf32> to vector<8x128xf32>
    %65 = arith.select %62, %64, %52 : vector<8x128xi1>, vector<8x128xf32>
    %66 = arith.subf %22, %65 : vector<8x128xf32>
    %67 = math.exp %66 : vector<8x128xf32>
    %cst_26 = arith.constant 0.000000e+00 : f32
    %68 = vector.shape_cast %25 : vector<1x128xi1> to vector<1x128xi1>
    %69 = vector.broadcast %68 : vector<1x128xi1> to vector<8x128xi1>
    %70 = vector.broadcast %cst_26 : f32 to vector<8x128xf32>
    %71 = arith.select %69, %67, %70 : vector<8x128xi1>, vector<8x128xf32>
    %c0_27 = arith.constant 0 : index
    %c0_28 = arith.constant 0 : index
    %72 = vector.load %arg9[%c0_27, %c0_28] : memref<128x128xf32, #tpu.memory_space<vmem>>, vector<128x128xf32>
    %cst_29 = arith.constant dense<0.000000e+00> : vector<8x128xf32>
    %73 = tpu.matmul %71, %72, %cst_29 {dimension_numbers = #tpu.dot_dimension_numbers<[1], [0], [0], [1], [0, 0, 1, 1], [], []>} : vector<8x128xf32>, vector<128x128xf32>, vector<8x128xf32> -> vector<8x128xf32>
    %cst_30 = arith.constant 1.000000e+00 : f32
    %74 = vector.shape_cast %25 : vector<1x128xi1> to vector<1x128xi1>
    %75 = vector.broadcast %74 : vector<1x128xi1> to vector<8x128xi1>
    %76 = vector.broadcast %cst_30 : f32 to vector<8x128xf32>
    %77 = arith.select %75, %73, %76 : vector<8x128xi1>, vector<8x128xf32>
    %78 = tpu.reciprocal %77 : vector<8x128xf32> -> vector<8x128xf32>
    %79 = arith.mulf %71, %78 : vector<8x128xf32>
    %c0_31 = arith.constant 0 : index
    %c0_32 = arith.constant 0 : index
    %80 = vector.load %arg10[%c0_31, %c0_32] : memref<8x128xf32, #tpu.memory_space<vmem>>, vector<8x128xf32>
    tpu.vector_store %arg10[%c0_31, %c0_32], %79 {strides = array<i32>} : memref<8x128xf32, #tpu.memory_space<vmem>>, vector<8x128xf32>,
    return
  }
  func.func @transform_0(%arg0: i32) -> (i32, i32) {
    %c0_i32 = arith.constant 0 : i32
    %c0_i32_0 = arith.constant 0 : i32
    return %arg0, %c0_i32 : i32, i32
  }
  func.func @transform_1(%arg0: i32) -> (i32, i32) {
    %c0_i32 = arith.constant 0 : i32
    %c0_i32_0 = arith.constant 0 : i32
    %c0_i32_1 = arith.constant 0 : i32
    return %c0_i32, %c0_i32_0 : i32, i32
  }
  func.func @transform_2(%arg0: i32) -> (i32, i32) {
    %c0_i32 = arith.constant 0 : i32
    %c0_i32_0 = arith.constant 0 : i32
    %c0_i32_1 = arith.constant 0 : i32
    return %c0_i32, %c0_i32_0 : i32, i32
  }
  func.func @transform_3(%arg0: i32) -> (i32, i32) {
    %c0_i32 = arith.constant 0 : i32
    %c0_i32_0 = arith.constant 0 : i32
    %c0_i32_1 = arith.constant 0 : i32
    return %c0_i32, %c0_i32_0 : i32, i32
  }
  func.func @transform_4(%arg0: i32) -> (i32, i32) {
    %c0_i32 = arith.constant 0 : i32
    %c0_i32_0 = arith.constant 0 : i32
    %c0_i32_1 = arith.constant 0 : i32
    return %c0_i32, %c0_i32_0 : i32, i32
  }
  func.func @transform_5(%arg0: i32) -> (i32, i32) {
    %c0_i32 = arith.constant 0 : i32
    %c0_i32_0 = arith.constant 0 : i32
    %c0_i32_1 = arith.constant 0 : i32
    return %c0_i32, %c0_i32_0 : i32, i32
  }
  func.func @transform_6(%arg0: i32) -> (i32, i32) {
    %c0_i32 = arith.constant 0 : i32
    %c0_i32_0 = arith.constant 0 : i32
    %c0_i32_1 = arith.constant 0 : i32
    return %c0_i32, %c0_i32_0 : i32, i32
  }
  func.func @transform_7(%arg0: i32) -> (i32, i32) {
    %c0_i32 = arith.constant 0 : i32
    %c0_i32_0 = arith.constant 0 : i32
    %c0_i32_1 = arith.constant 0 : i32
    return %c0_i32, %c0_i32_0 : i32, i32
  }
  func.func @transform_8(%arg0: i32) -> (i32, i32) {
    %c0_i32 = arith.constant 0 : i32
    %c0_i32_0 = arith.constant 0 : i32
    %c0_i32_1 = arith.constant 0 : i32
    return %c0_i32, %c0_i32_0 : i32, i32
  }
  func.func @transform_9(%arg0: i32) -> (i32, i32) {
    %c0_i32 = arith.constant 0 : i32
    %c0_i32_0 = arith.constant 0 : i32
    return %arg0, %c0_i32 : i32, i32
  }
}

</mosaic_0001>

<bundles_post_ra>
// kernel: tpu_custom_call.1
= control target key start
LH: loop header
LB: loop body
LE: loop exit
PB: predicated region body
PF: predicated region fallthrough
CT: control target
= control target key end

     0   :  { %14 = vsyncpa [#allocation3], 0  ;;  %s869_s0 = inlined_call_operand.vmem [shape: f32[8,8], index: 0, kind: input, shape index: {}]   ;;  %s870_s1 = inlined_call_operand.vmem [shape: bf16[8,128], index: 1, kind: input, shape index: {}]   ;;  %s871_s2 = inlined_call_operand.vmem [shape: f32[1,128], index: 2, kind: input, shape index: {}]   ;;  %s872_s3 = inlined_call_operand.vmem [shape: bf16[128,64], index: 3, kind: input, shape index: {}]   ;;  %s873_s4 = inlined_call_operand.vmem [shape: f32[1,64], index: 4, kind: input, shape index: {}]   ;;  %s874_s5 = inlined_call_operand.vmem [shape: bf16[64,128], index: 5, kind: input, shape index: {}]   ;;  %s875_s6 = inlined_call_operand.vmem [shape: f32[1,128], index: 6, kind: input, shape index: {}]   ;;  %s876_s7 = inlined_call_operand.vmem [shape: s32[1,128], index: 7, kind: input, shape index: {}]   ;;  %s877_s8 = inlined_call_operand.hbm [shape: f32[128,128], index: 8, kind: input, shape index: {}]   ;;  %s878_s9 = inlined_call_operand.hbm [shape: f32[8,128], index: 9, kind: output, shape index: {}]  }
   0x1   :  { %15 = vsyncpa [#allocation4], 0  ;;  %s674_s30 = smov [#allocation2]   ;;  %s626_s13 = scalar_lea.hbm %s877_s8, 2048 }
   0x2   :  { %s37_s10 = sshll.u32 %s674_s30, 4  ;;  %p627_p0 = scmp.ne.s32.totalorder %s877_s8, %s626_s13  ;;  %s38_s10 = int_to_ptr.vmem [resolvable:$true] %s37_s10 }
   0x3   :  { %p630_p1 = scmp.lt.u32.totalorder %s626_s13, %s877_s8 }
   0x5   :  { %p632_p2 = pnand %p630_p1, %p627_p0 }
   0x7   :  { %635 = shalt.err (!%p632_p2)
}
   0x8   :  { %s636_s18 = scalar_lea.vmem %s38_s10, 2048  ;;  %p641_p4 = scmp.lt.s32.totalorder %s38_s10, %s38_s10 }
   0x9   :  { %p637_p3 = scmp.ne.s32.totalorder %s38_s10, %s636_s18  ;;  %p642_p5 = scmp.lt.s32.totalorder %s636_s18, %s636_s18 }
   0xb   :  { %p643_p6 = por %p642_p5, %p641_p4 }
   0xd   :  { %p644_p7 = pnand %p643_p6, %p637_p3 }
   0xf   :  { %647 = shalt.err (!%p644_p7)
}
  0x10   :  { %s675_s19 = smov 128   ;;  %s676_s20 = smov 8  }
  0x11   :  { %43 = dma.hbm_to_vmem [thread:$0]  %s877_s8, 2048, %s38_s10, [#allocation3], %s675_s19, %s675_s19, %s676_s20  }
  0x12   :  { %670 = dma.done.wait [#allocation3], 2048  }
  0x13   :  { %671 = vsyncadd [#allocation3], 4294965248  ;;  %v677_v0 = vmov 0.0   ;;  %vm678_vm0 = vmmov 0   ;;  %vm62_vm1 = vcmask 1043456   ;;  %v48_v2 = vld [vmem:[%s869_s0] sm:$0xff]  ;;  %v308_v43 = vlaneseq }
  0x14   :  { %505 = vmatprep.subr.bf16.mxu1 %v677_v0  ;;  %507 = vmatprep.mubr.msk.bf16.mxu1 %vm678_vm0, %v677_v0  ;;  %v50_v1 = vld [vmem:[%s870_s1] sm:$0xf]  ;;  %v49_v4 = vpack.c.bf16 %v48_v2, %v48_v2  ;;  %vm58_vm2 = vcmask 64512   ;;  %v611_v6 = vld [vmem:[%s872_s3 + $0x8] sm:$0xff]   ;;  %v612_v7 = vld [vmem:[%s872_s3 + $0x10] sm:$0xff]   ;;  %vm260_vm3 = vcmask 523264  }
  0x15   :  { %531 = vmatprep.subr.bf16.mxu0 %v677_v0  ;;  %539 = vmatprep.mubr.msk.bf16.mxu0 %vm678_vm0, %v677_v0  ;;  %v64_v3 = vsel %vm62_vm1, %v50_v1, 0  ;;  %v610_v5 = vld [vmem:[%s872_s3] sm:$0xff]   ;;  %v613_v8 = vld [vmem:[%s872_s3 + $0x18] sm:$0xff]   ;;  %v615_v10 = vld [vmem:[%s872_s3 + $0x28] sm:$0xff]   ;;  %v679_v36 = vmov 0.0|0.0   ;;  %v309_v45 = vshrl.u32 %v308_v43, 7 }
  0x16   :  { %506 = vmatpush3.bf16.msra.mxu1 %v64_v3  ;;  %v614_v9 = vld [vmem:[%s872_s3 + $0x20] sm:$0xff]   ;;  %v616_v11 = vld [vmem:[%s872_s3 + $0x30] sm:$0xff]   ;;  %v617_v12 = vld [vmem:[%s872_s3 + $0x38] sm:$0xff]   ;;  %v680_v47 = vmov 0  }
  0x17   :  { %511 = vmatprep.subr.bf16.mxu1 %v677_v0  ;;  %v618_v13 = vld [vmem:[%s874_s5] sm:$0xff]   ;;  %v619_v14 = vld [vmem:[%s874_s5 + $0x8] sm:$0xff]   ;;  %v620_v23 = vld [vmem:[%s874_s5 + $0x10] sm:$0xff]   ;;  %v310_v46 = vsub.s32 0, %v309_v45 }
  0x18   :  { %532 = vmatpush3.bf16.msra.mxu0 %v618_v13  ;;  %v454_v15 = vld [vmem:[%s871_s2] ss:$0 sm:$0xff]  ;;  %v621_v24 = vld [vmem:[%s874_s5 + $0x18] sm:$0xff]   ;;  %v350_v34 = vld [vmem:[#allocation2 + $0x8] sm:$0xff] }
  0x19   :  { %508 = vmatmul.mubr.msk.bf16.vlgmr.msra.gmra.mrb[0].mxu1 %vm58_vm2, %v49_v4  ;;  %533 = vmatprep.subr.bf16.mxu0 %v677_v0  ;;  %v456_v25 = vld [vmem:[%s873_s4] ss:$0 sm:$0xff]  ;;  %v351_v35 = vld [vmem:[#allocation2 + $0x10] sm:$0xff]  ;;  %v352_v38 = vld [vmem:[#allocation2 + $0x18] sm:$0xff] }
  0x1a   :  { %512 = vmatpush3.bf16.msra.mxu1 %v610_v5  ;;  %527 = vmatprep.mubr.msk.bf16.mxu1 %vm678_vm0, %v677_v0  ;;  %v349_v33 = vld [vmem:[#allocation2] sm:$0xff]  ;;  %v582_v39 = vpack.c.bf16 %v352_v38, %v351_v35  ;;  %v354_v41 = vld [vmem:[#allocation2 + $0x28] sm:$0xff]  ;;  %v355_v2 = vld [vmem:[#allocation2 + $0x30] sm:$0xff] }
  0x1b   :  { %513 = vmatprep.subr.bf16.mxu1 %v677_v0  ;;  %v579_v37 = vpack.c.bf16 %v350_v34, %v349_v33  ;;  %v353_v40 = vld [vmem:[#allocation2 + $0x20] sm:$0xff]  ;;  %v356_v3 = vld [vmem:[#allocation2 + $0x38] sm:$0xff] }
  0x1c   :  { %534 = vmatpush3.bf16.msra.mxu0 %v619_v14  ;;  %v585_v42 = vpack.c.bf16 %v354_v41, %v353_v40  ;;  %v820_v44 = vld [vmem:[%s876_s7] sm:$0x1]  ;;  %v588_v4 = vpack.c.bf16 %v356_v3, %v355_v2  ;;  %v363_v14 = vld [vmem:[#allocation2 + $0x70] sm:$0xff] }
  0x1d   :  { %535 = vmatprep.subr.bf16.mxu0 %v677_v0  ;;  %vm328_vm4 = vcmp.eq.s32.totalorder %v820_v44, 2  ;;  %vm306_vm5 = vcmp.eq.s32.totalorder %v820_v44, 0  ;;  %vm317_vm6 = vcmp.eq.s32.totalorder %v820_v44, 1  ;;  %v465_v53 = vld [vmem:[%s875_s6] ss:$0 sm:$0xff]  ;;  %vm305_vm10 = vcmp.lt.s32.totalorder %v820_v44, 3 }
  0x1e   :  { %514 = vmatpush3.bf16.msra.mxu1 %v611_v6  ;;  %v329_v48 = vsel %vm328_vm4, 1, %v680_v47  ;;  %v307_v49 = vsel %vm306_vm5, 1, %v680_v47  ;;  %v318_v52 = vsel %vm317_vm6, 1, %v680_v47  ;;  %v357_v5 = vld [vmem:[#allocation2 + $0x40] sm:$0xff]  ;;  %v358_v6 = vld [vmem:[#allocation2 + $0x48] sm:$0xff]  ;;  %s681_s6 = smov [#allocation5]  }
  0x1f   :  { %515 = vmatprep.subr.bf16.mxu1 %v677_v0  ;;  %v333_v50 = vrot.slane %v329_v48, %v310_v46  ;;  %v311_v51 = vrot.slane %v307_v49, %v310_v46  ;;  %v322_v57 = vrot.slane %v318_v52, %v310_v46  ;;  %s445_s7 = sshll.u32 %s681_s6, 4  ;;  %s446_s7 = int_to_ptr.vmem [resolvable:$true] %s445_s7 }
  0x20   :  { %536 = vmatpush3.bf16.msra.mxu0 %v620_v23  ;;  %s648_s0 = scalar_lea.vmem %s446_s7, 128  ;;  %p653_p9 = scmp.lt.s32.totalorder %s446_s7, %s446_s7 }
  0x21   :  { %537 = vmatprep.subr.bf16.mxu0 %v677_v0  ;;  %vm828_vm7 = vcmp.eq.s32.totalorder %v333_v50, 1  ;;  %vm832_vm8 = vcmp.eq.s32.totalorder %v311_v51, 1  ;;  %vm840_vm9 = vcmp.eq.s32.totalorder %v322_v57, 1  ;;  %p649_p8 = scmp.ne.s32.totalorder %s446_s7, %s648_s0  ;;  %p654_p10 = scmp.lt.s32.totalorder %s648_s0, %s648_s0 }
  0x22   :  { %516 = vmatpush3.bf16.msra.mxu1 %v612_v7  ;;  %v591_v7 = vpack.c.bf16 %v358_v6, %v357_v5 }
  0x23   :  { %517 = vmatprep.subr.bf16.mxu1 %v677_v0  ;;  %p655_p11 = por %p654_p10, %p653_p9 }
  0x24   :  { %538 = vmatpush3.bf16.msra.mxu0 %v621_v24 }
  0x25   :  { %578 = vmatprep.subr.bf16.mxu0 %v679_v36  ;;  %p656_p12 = pnand %p655_p11, %p649_p8 }
  0x26   :  { %518 = vmatpush3.bf16.msra.mxu1 %v613_v8  ;;  %v359_v8 = vld [vmem:[#allocation2 + $0x50] sm:$0xff] }
  0x27   :  { %519 = vmatprep.subr.bf16.mxu1 %v677_v0 }
  0x2a   :  { %520 = vmatpush3.bf16.msra.mxu1 %v614_v9  ;;  %v360_v9 = vld [vmem:[#allocation2 + $0x58] sm:$0xff] }
  0x2b   :  { %521 = vmatprep.subr.bf16.mxu1 %v677_v0 }
  0x2e   :  { %522 = vmatpush3.bf16.msra.mxu1 %v615_v10  ;;  %v594_v10 = vpack.c.bf16 %v360_v9, %v359_v8 }
  0x2f   :  { %523 = vmatprep.subr.bf16.mxu1 %v677_v0 }
  0x32   :  { %524 = vmatpush3.bf16.msra.mxu1 %v616_v11  ;;  %v361_v11 = vld [vmem:[#allocation2 + $0x60] sm:$0xff] }
  0x33   :  { %525 = vmatprep.subr.bf16.mxu1 %v677_v0 }
  0x36   :  { %526 = vmatpush3.bf16.msra.mxu1 %v617_v12  ;;  %v362_v12 = vld [vmem:[#allocation2 + $0x68] sm:$0xff] }
  0x37   :  { %v597_v13 = vpack.c.bf16 %v362_v12, %v361_v11 }
  0xec   :  { %v100_v16 = vpop.f32.mrb[0].mxu1 }
  0xed   :  { %v101_v17 = vadd.f32 %v454_v15, %v100_v16  ;;  %v509_v18 = vpop.f32.mrb[1].mxu1  ;;  %v364_v15 = vld [vmem:[#allocation2 + $0x78] sm:$0xff] }
  0xee   :  { %v103_v19 = vpop.f32.mrb[2].mxu1  ;;  %v600_v16 = vpack.c.bf16 %v364_v15, %v363_v14 }
  0xef   :  { %v106_v20 = vmax.f32 %v101_v17, 0.0  ;;  %v510_v21 = vpop.f32.mrb[3].mxu1 }
  0xf1   :  { %v107_v22 = vpack.c.bf16 %v106_v20, %v106_v20 }
  0xf3   :  { %528 = vmatmul.mubr.bf16.vlgmr.msra.gmra.mrb[4].mxu1 %v107_v22 }
 0x1c6   :  { %v213_v26 = vpop.f32.mrb[4].mxu1 }
 0x1c7   :  { %v214_v27 = vadd.f32 %v456_v25, %v213_v26  ;;  %v529_v28 = vpop.f32.mrb[5].mxu1  ;;  %v342_v25 = vsel %vm305_vm10, 1, %v680_v47 }
 0x1c8   :  { %v216_v29 = vpop.f32.mrb[6].mxu1  ;;  %v346_v26 = vrot.slane %v342_v25, %v310_v46 }
 0x1c9   :  { %v219_v30 = vmax.f32 %v214_v27, 0.0  ;;  %v530_v31 = vpop.f32.mrb[7].mxu1 }
 0x1ca   :  { %vm347_vm11 = vcmp.eq.s32.totalorder %v346_v26, 1 }
 0x1cb   :  { %v220_v32 = vpack.c.bf16 %v219_v30, %v219_v30 }
 0x1cd   :  { %540 = vmatmul.mubr.msk.bf16.vlgmr.msra.gmra.mrb[0].mxu0 %vm260_vm3, %v220_v32 }
 0x1ce   :  { %575 = vmatprep.mubr.msk.f32.mxu0 %vm678_vm0, %v677_v0  ;;  %580 = vmatpush3.bf16.msra.mxu0 %v579_v37 }
 0x1cf   :  { %581 = vmatprep.subr.bf16.mxu0 %v679_v36 }
 0x1d2   :  { %583 = vmatpush3.bf16.msra.mxu0 %v582_v39 }
 0x1d3   :  { %584 = vmatprep.subr.bf16.mxu0 %v679_v36 }
 0x1d6   :  { %586 = vmatpush3.bf16.msra.mxu0 %v585_v42 }
 0x1d7   :  { %587 = vmatprep.subr.bf16.mxu0 %v679_v36 }
 0x1da   :  { %589 = vmatpush3.bf16.msra.mxu0 %v588_v4 }
 0x1db   :  { %590 = vmatprep.subr.bf16.mxu0 %v679_v36 }
 0x1de   :  { %592 = vmatpush3.bf16.msra.mxu0 %v591_v7 }
 0x1df   :  { %593 = vmatprep.subr.bf16.mxu0 %v679_v36 }
 0x1e2   :  { %595 = vmatpush3.bf16.msra.mxu0 %v594_v10 }
 0x1e3   :  { %596 = vmatprep.subr.bf16.mxu0 %v679_v36 }
 0x1e6   :  { %598 = vmatpush3.bf16.msra.mxu0 %v597_v13 }
 0x1e7   :  { %599 = vmatprep.subr.bf16.mxu0 %v679_v36 }
 0x1ea   :  { %601 = vmatpush3.bf16.msra.mxu0 %v600_v16 }
 0x2a0   :  { %v298_v54 = vpop.f32.mrb[0].mxu0 }
 0x2a1   :  { %v299_v58 = vadd.f32 %v465_v53, %v298_v54  ;;  %v541_v59 = vpop.f32.mrb[1].mxu0 }
 0x2a2   :  { %v301_v60 = vpop.f32.mrb[2].mxu0 }
 0x2a3   :  { %v542_v61 = vpop.f32.mrb[3].mxu0  ;;  %v335_v62 = vsel %vm828_vm7, %v299_v58, -1e+30  ;;  %v313_v63 = vsel %vm832_vm8, %v299_v58, -1e+30 }
 0x2a4   :  { %336 = vmax.xlane.f32.xlu1 %v335_v62  ;;  %314 = vmax.xlane.f32.xlu0 %v313_v63  ;;  %v324_v1 = vsel %vm840_vm9, %v299_v58, -1e+30 }
 0x2a8   :  { %325 = vmax.xlane.f32.xlu0 %v324_v1 }
 0x331   :  { %v315_v17 = vpop.xlane.xlu0 %314  ;;  %v337_v20 = vpop.xlane.xlu1 %336 }
 0x332   :  { %v316_v18 = vsel %vm832_vm8, %v315_v17, 0.0 }
 0x335   :  { %v326_v19 = vpop.xlane.xlu0 %325 }
 0x336   :  { %v327_v21 = vsel %vm840_vm9, %v326_v19, %v316_v18 }
 0x337   :  { %v338_v22 = vsel %vm828_vm7, %v337_v20, %v327_v21 }
 0x338   :  { %v339_v23 = vsub.f32 %v299_v58, %v338_v22 }
 0x33a   :  { %v340_v24 = vmul.f32 1.442695, %v339_v23 }
 0x33c   :  { %622 = vpow2.f32 %v340_v24 }
 0x346   :  { %v623_v27 = vpop.eup %622 }
 0x347   :  { %576 = vmatmul.mubr.msk.f32.vlgmr.msra.gmra.mrb[4].mxu0 %vm347_vm11, %v623_v27  ;;  %v348_v32 = vsel %vm347_vm11, %v623_v27, 0.0 }
 0x41a   :  { %v431_v28 = vpop.f32.mrb[4].mxu0 }
 0x41b   :  { %v435_v29 = vsel %vm347_vm11, %v431_v28, 1.0  ;;  %v577_v30 = vpop.f32.mrb[5].mxu0 }
 0x41c   :  { %624 = vrcp.f32 %v435_v29 }
 0x426   :  { %v625_v31 = vpop.eup %624 }
 0x427   :  { %v437_v33 = vmul.f32 %v625_v31, %v348_v32 }
 0x429   :  { %438 = vst [vmem:[#allocation5] sm:$0xff] %v437_v33 }
 0x42a   :  { %659 = shalt.err (!%p656_p12)
}
 0x42b   :  { %s660_s10 = scalar_lea.hbm %s878_s9, 128 }
 0x42c   :  { %p661_p13 = scmp.ne.s32.totalorder %s878_s9, %s660_s10  ;;  %p664_p0 = scmp.lt.u32.totalorder %s660_s10, %s878_s9 }
 0x42e   :  { %p666_p1 = pnand %p664_p0, %p661_p13 }
 0x430   :  { %669 = shalt.err (!%p666_p1)
}
 0x431   :  { %448 = dma.vmem_to_hbm [thread:$0]  %s446_s7, 128, %s878_s9, [#allocation4]  }
 0x432   :  { %672 = dma.done.wait [#allocation4], 128  }
 0x433   :  { %673 = vsyncadd [#allocation4], 4294967168 }
 0x434   :  { %452 = vsyncpa [#allocation3], 1 }
 0x435   :  { %453 = vsyncpa [#allocation4], 1 }

</bundles_post_ra>
